<compile_context>
chip_gen: v7x
topology: tpu7x:2x2x1
jax: 0.10.0
libtpu: 0.0.40
codegen_flags: <defaults>
</compile_context>

<pallas_src>
import functools

import jax
import jax.numpy as jnp
from jax.experimental import pallas as pl
from jax.experimental.pallas import tpu as pltpu


LANES = 128


# ---------------------------------------------------------------------------
# Kernels
# ---------------------------------------------------------------------------

def _sage_fused_kernel(a_ref, xaug_ref, w1_ref, b1_ref, w2_ref, b2_ref,
                       out_ref, *, deg_col):
    """Fused conv1 -> ReLU -> conv2 for a graph that fits VMEM whole.

    a_ref:    [N, N]       bf16 0/1 adjacency (dst-major rows)
    xaug_ref: [N, W1]      bf16 features, ones at column `deg_col`, zero pad
    w1_ref:   [2*W1, W2]   f32  [W_self1; W_neigh1] zero-embedded
    b1_ref:   [1, W2]      f32  bias1 with a 1.0 marker at column `hid`
    w2_ref:   [2*W2, Wout] f32  [W_self2; W_neigh2] zero-embedded
    b2_ref:   [1, Wout]    f32
    out_ref:  [N, Wout]    f32  (lane-dense padded; sliced outside)
    """
    a = a_ref[...]                                    # bf16 [N, N]
    xaug = xaug_ref[...]                              # bf16 [N, W1]

    # ----- layer 1: aggregate (degree rides in the ones column), project, ReLU
    acc1 = jnp.dot(a, xaug, preferred_element_type=jnp.float32)       # [N, W1]
    deg = acc1[:, deg_col:deg_col + 1]
    inv_deg = jnp.where(deg > 0.0, 1.0 / jnp.maximum(deg, 1.0), 0.0)
    agg1 = acc1 * inv_deg
    cat1 = jnp.concatenate([xaug.astype(jnp.float32), agg1], axis=-1)
    h1 = jnp.dot(cat1, w1_ref[...], preferred_element_type=jnp.float32) + b1_ref[...]
    h1 = jnp.maximum(h1, 0.0)                         # [N, W2], ones marker via bias

    # ----- layer 2: reuse inv_deg; bf16 aggregation, f32 accumulation
    acc2 = jnp.dot(a, h1.astype(jnp.bfloat16), preferred_element_type=jnp.float32)
    agg2 = acc2 * inv_deg
    cat2 = jnp.concatenate([h1, agg2], axis=-1)
    out = jnp.dot(cat2, w2_ref[...], preferred_element_type=jnp.float32) + b2_ref[...]
    out_ref[...] = out.astype(out_ref.dtype)


def _sage_layer_kernel(a_ref, hsrc_ref, hself_ref, wcat_ref, b_ref,
                       out_ref, acc_ref, *, deg_col, apply_relu):
    """One SAGEConv('mean') layer; grid = (dst row blocks, K source blocks).

    a_ref:     [TM, TK]    bf16 adjacency tile
    hsrc_ref:  [TK, W]     bf16 source features (ones at column `deg_col`)
    hself_ref: [TM, W]     bf16 self features for this row block
    wcat_ref:  [2*W, Fout] f32  [W_self; W_neigh] zero-embedded
    b_ref:     [1, Fout]   f32  bias (+ ones marker for the hidden layer)
    out_ref:   [TM, Fout]
    acc_ref:   [TM, W]     f32 VMEM accumulator across K blocks
    """
    k = pl.program_id(1)

    @pl.when(k == 0)
    def _init():
        acc_ref[...] = jnp.zeros_like(acc_ref)

    # Dominant N^2 work: bf16 x bf16 MXU matmul, f32 accumulation in VMEM.
    acc_ref[...] += jnp.dot(a_ref[...], hsrc_ref[...],
                            preferred_element_type=jnp.float32)

    @pl.when(k == pl.num_programs(1) - 1)
    def _finalize():
        acc = acc_ref[...]
        deg = acc[:, deg_col:deg_col + 1]              # ones column -> in-degree
        inv_deg = jnp.where(deg > 0.0, 1.0 / jnp.maximum(deg, 1.0), 0.0)
        agg = acc * inv_deg
        # Fused projection: concat([self, agg]) @ [W_self; W_neigh] + b
        cat = jnp.concatenate([hself_ref[...].astype(jnp.float32), agg], axis=-1)
        out = jnp.dot(cat, wcat_ref[...], preferred_element_type=jnp.float32) + b_ref[...]
        if apply_relu:
            out = jnp.maximum(out, 0.0)
        out_ref[...] = out.astype(out_ref.dtype)


# ---------------------------------------------------------------------------
# Host-side helpers
# ---------------------------------------------------------------------------

def _round_up(v, m):
    return ((v + m - 1) // m) * m


def _vmem_capacity_bytes():
    try:
        return int(pltpu.get_tpu_info().vmem_capacity_bytes)
    except Exception:
        return 64 * 1024 * 1024       # conservative (v7x per-core VMEM)


def _embed(w, rows, cols):
    z = jnp.zeros((rows, cols), jnp.float32)
    return z.at[: w.shape[0], : w.shape[1]].set(w.astype(jnp.float32))


def _prepare_weights(params):
    """Zero-embed + concat weights once; reserve a 'ones' column per layer."""
    in_f, hid = params["w_self1"].shape
    out_f = params["w_self2"].shape[1]
    w_src = _round_up(in_f + 1, LANES)    # layer-1 source width (ones col @ in_f)
    w_hid = _round_up(hid + 1, LANES)     # layer-1 output / layer-2 source width
    w_out = _round_up(out_f, LANES)       # lane-dense final output width

    w1 = jnp.concatenate([_embed(params["w_self1"], w_src, w_hid),
                          _embed(params["w_neigh1"], w_src, w_hid)], axis=0)
    b1 = _embed(params["b1"], 1, w_hid).at[0, hid].set(1.0)   # ones marker col
    w2 = jnp.concatenate([_embed(params["w_self2"], w_hid, w_out),
                          _embed(params["w_neigh2"], w_hid, w_out)], axis=0)
    b2 = _embed(params["b2"], 1, w_out)
    return dict(w1=w1, b1=b1, w2=w2, b2=b2, w_src=w_src, w_hid=w_hid,
                w_out=w_out, in_f=in_f, hid=hid, out_f=out_f)


def _augment_features(x, width, ones_col, n_pad):
    """Zero-pad features to [n_pad, width] bf16 and set the ones column."""
    n, f = x.shape
    xa = jnp.zeros((n_pad, width), jnp.float32)
    xa = xa.at[:n, :f].set(x.astype(jnp.float32))
    xa = xa.at[:, ones_col].set(1.0)
    return xa.astype(jnp.bfloat16)


def _pad_adjacency(a, n_pad):
    n = a.shape[0]
    if n_pad > n:
        a = jnp.pad(a, ((0, n_pad - n), (0, n_pad - n)))
    return a.astype(jnp.bfloat16)     # 0/1 is exact in bf16


def _choose_blocked_tiles(n, block_rows, block_k):
    if block_rows is None:
        block_rows = 16
        while block_rows * 2 <= min(n, 256):
            block_rows *= 2
    else:
        block_rows = max(16, (int(block_rows) // 16) * 16)
    nb = -(-n // block_rows)
    if nb % 2 == 1 and block_rows > 16:
        # Keep an even number of row tiles so the "parallel" axis splits
        # evenly across v7x's two TensorCores (harmless on v5e/v6e).
        block_rows //= 2
    n_pad = _round_up(n, block_rows)

    if block_k is None:
        if n_pad <= 512:
            block_k = n_pad                  # single K step
        else:
            block_k = 512
            while block_k > 128 and n_pad % block_k != 0:
                block_k -= 128
            if n_pad % block_k != 0:
                block_k = n_pad
    else:
        block_k = min(int(block_k), n_pad)
        if n_pad % block_k != 0 or (block_k % 128 != 0 and block_k != n_pad):
            block_k = n_pad                  # fall back to an untiled K axis
    return block_rows, block_k, n_pad


# ---------------------------------------------------------------------------
# pallas_call wrappers
# ---------------------------------------------------------------------------

def _sage_layer(a_b, feats, w_cat, b_pad, *, deg_col, apply_relu, out_dtype,
                block_rows, block_k):
    """Blocked, K-tiled single SAGEConv layer."""
    n_pad = a_b.shape[0]
    w_src = feats.shape[1]
    f_out = w_cat.shape[1]
    grid = (n_pad // block_rows, n_pad // block_k)

    kernel = functools.partial(_sage_layer_kernel, deg_col=deg_col,
                               apply_relu=apply_relu)
    return pl.pallas_call(
        kernel,
        out_shape=jax.ShapeDtypeStruct((n_pad, f_out), out_dtype),
        grid=grid,
        in_specs=[
            pl.BlockSpec((block_rows, block_k), lambda i, k: (i, k)),  # A tile
            pl.BlockSpec((block_k, w_src), lambda i, k: (k, 0)),       # source feats
            pl.BlockSpec((block_rows, w_src), lambda i, k: (i, 0)),    # self feats
            pl.BlockSpec((2 * w_src, f_out), lambda i, k: (0, 0)),     # [W_self; W_neigh]
            pl.BlockSpec((1, f_out), lambda i, k: (0, 0)),             # bias
        ],
        out_specs=pl.BlockSpec((block_rows, f_out), lambda i, k: (i, 0)),
        scratch_shapes=[pltpu.VMEM((block_rows, w_src), jnp.float32)],
        compiler_params=pltpu.CompilerParams(
            dimension_semantics=("parallel", "arbitrary")),
    )(a_b, feats, feats, w_cat, b_pad)


def sage_forward(a, x, params, *, block_rows=None, block_k=None,
                 force_blocked=False):
    """SAGE.forward: conv1 -> ReLU -> conv2 (matches the PyTorch module)."""
    n = a.shape[0]
    prep = _prepare_weights(params)
    vmem_cap = _vmem_capacity_bytes()
    fused_limit = 4096 if vmem_cap >= (96 << 20) else 2048

    if not force_blocked and n <= fused_limit:
        # Small/mid graph: one fused, grid-less invocation — A read from HBM
        # once, h1 never leaves VMEM.
        a_b = a.astype(jnp.bfloat16)
        x_aug = _augment_features(x, prep["w_src"], prep["in_f"], n)
        est = (2 * n * n
               + n * (2 * prep["w_src"] + 6 * prep["w_hid"] + 4 * prep["w_out"])
               + 4 * (int(prep["w1"].size) + int(prep["w2"].size))
               + (4 << 20))
        cparams = None
        if est > (32 << 20):
            cparams = pltpu.CompilerParams(
                vmem_limit_bytes=int(min(vmem_cap - (4 << 20), 2 * est)))
        out_pad = pl.pallas_call(
            functools.partial(_sage_fused_kernel, deg_col=prep["in_f"]),
            out_shape=jax.ShapeDtypeStruct((n, prep["w_out"]), jnp.float32),
            compiler_params=cparams,
        )(a_b, x_aug, prep["w1"], prep["b1"], prep["w2"], prep["b2"])
        return out_pad[:, :prep["out_f"]]

    # ---- blocked / K-tiled scale path ----
    block_rows, block_k, n_pad = _choose_blocked_tiles(n, block_rows, block_k)
    a_b = _pad_adjacency(a, n_pad)
    x_aug = _augment_features(x, prep["w_src"], prep["in_f"], n_pad)

    # Layer 1: lane-padded (128) bf16 output; ones marker in the padding gives
    # layer 2 its degree for free inside its own aggregation matmul.
    h1 = _sage_layer(a_b, x_aug, prep["w1"], prep["b1"],
                     deg_col=prep["in_f"], apply_relu=True,
                     out_dtype=jnp.bfloat16,
                     block_rows=block_rows, block_k=block_k)
    out_pad = _sage_layer(a_b, h1, prep["w2"], prep["b2"],
                          deg_col=prep["hid"], apply_relu=False,
                          out_dtype=jnp.float32,
                          block_rows=block_rows, block_k=block_k)
    return out_pad[:n, :prep["out_f"]]


# ---------------------------------------------------------------------------
# Pure-JAX reference & params
# ---------------------------------------------------------------------------

def sage_forward_ref(a, x, params):
    def layer(h, ws, wn, b, relu):
        deg = a.sum(axis=-1, keepdims=True)
        agg = (a @ h) * jnp.where(deg > 0, 1.0 / jnp.maximum(deg, 1.0), 0.0)
        out = h @ ws + agg @ wn + b
        return jnp.maximum(out, 0.0) if relu else out

    h = layer(x, params["w_self1"], params["w_neigh1"], params["b1"], True)
    return layer(h, params["w_self2"], params["w_neigh2"], params["b2"], False)


def init_params(key, in_feats, hid_feats, out_feats):
    ks = jax.random.split(key, 4)

    def xavier(k, fan_in, fan_out):
        scale = jnp.sqrt(2.0 / (fan_in + fan_out))
        return jax.random.normal(k, (fan_in, fan_out), jnp.float32) * scale

    return {
        "w_self1": xavier(ks[0], in_feats, hid_feats),
        "w_neigh1": xavier(ks[1], in_feats, hid_feats),
        "b1": jnp.zeros((1, hid_feats), jnp.float32),
        "w_self2": xavier(ks[2], hid_feats, out_feats),
        "w_neigh2": xavier(ks[3], hid_feats, out_feats),
        "b2": jnp.zeros((1, out_feats), jnp.float32),
    }


def _random_graph(k, n, p):
    adj = jax.random.bernoulli(k, p=p, shape=(n, n)).astype(jnp.float32)
    return adj * (1.0 - jnp.eye(n, dtype=jnp.float32))   # no self loops


if __name__ == "__main__":
    N, IN_FEATS, HID_FEATS, OUT_FEATS = 64, 16, 32, 8

    key = jax.random.PRNGKey(0)
    k_adj, k_feat, k_param, k_adj2, k_feat2 = jax.random.split(key, 5)

    adj = _random_graph(k_adj, N, 0.2)
    x = jax.random.normal(k_feat, (N, IN_FEATS), jnp.float32)
    params = init_params(k_param, IN_FEATS, HID_FEATS, OUT_FEATS)

    # --- fused single-invocation path (the small test graph) ---
    out = jax.block_until_ready(sage_forward(adj, x, params))
    ref = sage_forward_ref(adj, x, params)
    assert out.shape == (N, OUT_FEATS)
    # bf16 feature/aggregation rounding (review-recommended) -> ~1e-2 scale error
    assert jnp.allclose(out, ref, atol=4e-2, rtol=4e-2), (
        "fused path mismatch, max abs err = %e"
        % float(jnp.max(jnp.abs(out - ref))))

    # --- blocked, K-tiled scale path (exercised on a larger graph) ---
    N2 = 256
    adj2 = _random_graph(k_adj2, N2, 0.1)
    x2 = jax.random.normal(k_feat2, (N2, IN_FEATS), jnp.float32)
    out2 = jax.block_until_ready(
        sage_forward(adj2, x2, params, block_rows=128, block_k=128,
                     force_blocked=True))
    ref2 = sage_forward_ref(adj2, x2, params)
    assert out2.shape == (N2, OUT_FEATS)
    assert jnp.allclose(out2, ref2, atol=4e-2, rtol=4e-2), (
        "blocked path mismatch, max abs err = %e"
        % float(jnp.max(jnp.abs(out2 - ref2))))

    print("KERNEL_OK")
</pallas_src>

<mosaic_0001>
module attributes {stable_mosaic.version = 11 : i64} {
  func.func @_sage_fused_kernel(%arg0: memref<64x64xbf16, #tpu.memory_space<vmem>>, %arg1: memref<64x128xbf16, #tpu.memory_space<vmem>>, %arg2: memref<256x128xf32, #tpu.memory_space<vmem>>, %arg3: memref<1x128xf32, #tpu.memory_space<vmem>>, %arg4: memref<256x128xf32, #tpu.memory_space<vmem>>, %arg5: memref<1x128xf32, #tpu.memory_space<vmem>>, %arg6: memref<64x128xf32, #tpu.memory_space<vmem>>) attributes {dimension_semantics = [], scalar_prefetch = 0 : i64, scratch_operands = 0 : i64, tpu.core_type = #tpu.core_type<tc>} {
    %c0 = arith.constant 0 : index
    %c0_0 = arith.constant 0 : index
    %0 = vector.load %arg0[%c0, %c0_0] : memref<64x64xbf16, #tpu.memory_space<vmem>>, vector<64x64xbf16>
    %c0_1 = arith.constant 0 : index
    %c0_2 = arith.constant 0 : index
    %1 = vector.load %arg1[%c0_1, %c0_2] : memref<64x128xbf16, #tpu.memory_space<vmem>>, vector<64x128xbf16>
    %cst = arith.constant dense<0.000000e+00> : vector<64x128xf32>
    %2 = tpu.matmul %0, %1, %cst {dimension_numbers = #tpu.dot_dimension_numbers<[1], [0], [0], [1], [0, 0, 1, 1], [], []>} : vector<64x64xbf16>, vector<64x128xbf16>, vector<64x128xf32> -> vector<64x128xf32>
    %3 = vector.extract_strided_slice %2 {offsets = [0, 16], sizes = [64, 1], strides = [1, 1]} : vector<64x128xf32> to vector<64x1xf32>
    %cst_3 = arith.constant 0.000000e+00 : f32
    %4 = vector.broadcast %cst_3 : f32 to vector<64x1xf32>
    %5 = arith.cmpf ogt, %3, %4 : vector<64x1xf32>
    %cst_4 = arith.constant 1.000000e+00 : f32
    %6 = vector.broadcast %cst_4 : f32 to vector<64x1xf32>
    %7 = arith.maximumf %3, %6 : vector<64x1xf32>
    %cst_5 = arith.constant 1.000000e+00 : f32
    %8 = vector.broadcast %cst_5 : f32 to vector<64x1xf32>
    %9 = arith.divf %8, %7 : vector<64x1xf32>
    %cst_6 = arith.constant 0.000000e+00 : f32
    %10 = vector.broadcast %cst_6 : f32 to vector<64x1xf32>
    %11 = arith.select %5, %9, %10 : vector<64x1xi1>, vector<64x1xf32>
    %12 = vector.broadcast %11 : vector<64x1xf32> to vector<64x128xf32>
    %13 = arith.mulf %2, %12 : vector<64x128xf32>
    %14 = arith.extf %1 : vector<64x128xbf16> to vector<64x128xf32>
    %15 = tpu.concatenate %14, %13 in 1 : vector<64x128xf32>, vector<64x128xf32> -> vector<64x256xf32>
    %c0_7 = arith.constant 0 : index
    %c0_8 = arith.constant 0 : index
    %16 = vector.load %arg2[%c0_7, %c0_8] : memref<256x128xf32, #tpu.memory_space<vmem>>, vector<256x128xf32>
    %cst_9 = arith.constant dense<0.000000e+00> : vector<64x128xf32>
    %17 = tpu.matmul %15, %16, %cst_9 {dimension_numbers = #tpu.dot_dimension_numbers<[1], [0], [0], [1], [0, 0, 1, 1], [], []>} : vector<64x256xf32>, vector<256x128xf32>, vector<64x128xf32> -> vector<64x128xf32>
    %c0_10 = arith.constant 0 : index
    %c0_11 = arith.constant 0 : index
    %18 = vector.load %arg3[%c0_10, %c0_11] : memref<1x128xf32, #tpu.memory_space<vmem>>, vector<1x128xf32>
    %19 = vector.broadcast %18 : vector<1x128xf32> to vector<64x128xf32>
    %20 = arith.addf %17, %19 : vector<64x128xf32>
    %cst_12 = arith.constant 0.000000e+00 : f32
    %21 = vector.broadcast %cst_12 : f32 to vector<64x128xf32>
    %22 = arith.maximumf %20, %21 : vector<64x128xf32>
    %23 = arith.truncf %22 : vector<64x128xf32> to vector<64x128xbf16>
    %cst_13 = arith.constant dense<0.000000e+00> : vector<64x128xf32>
    %24 = tpu.matmul %0, %23, %cst_13 {dimension_numbers = #tpu.dot_dimension_numbers<[1], [0], [0], [1], [0, 0, 1, 1], [], []>} : vector<64x64xbf16>, vector<64x128xbf16>, vector<64x128xf32> -> vector<64x128xf32>
    %25 = vector.broadcast %11 : vector<64x1xf32> to vector<64x128xf32>
    %26 = arith.mulf %24, %25 : vector<64x128xf32>
    %27 = tpu.concatenate %22, %26 in 1 : vector<64x128xf32>, vector<64x128xf32> -> vector<64x256xf32>
    %c0_14 = arith.constant 0 : index
    %c0_15 = arith.constant 0 : index
    %28 = vector.load %arg4[%c0_14, %c0_15] : memref<256x128xf32, #tpu.memory_space<vmem>>, vector<256x128xf32>
    %cst_16 = arith.constant dense<0.000000e+00> : vector<64x128xf32>
    %29 = tpu.matmul %27, %28, %cst_16 {dimension_numbers = #tpu.dot_dimension_numbers<[1], [0], [0], [1], [0, 0, 1, 1], [], []>} : vector<64x256xf32>, vector<256x128xf32>, vector<64x128xf32> -> vector<64x128xf32>
    %c0_17 = arith.constant 0 : index
    %c0_18 = arith.constant 0 : index
    %30 = vector.load %arg5[%c0_17, %c0_18] : memref<1x128xf32, #tpu.memory_space<vmem>>, vector<1x128xf32>
    %31 = vector.broadcast %30 : vector<1x128xf32> to vector<64x128xf32>
    %32 = arith.addf %29, %31 : vector<64x128xf32>
    %c0_19 = arith.constant 0 : index
    %c0_20 = arith.constant 0 : index
    %33 = vector.load %arg6[%c0_19, %c0_20] : memref<64x128xf32, #tpu.memory_space<vmem>>, vector<64x128xf32>
    tpu.vector_store %arg6[%c0_19, %c0_20], %32 {strides = array<i32>} : memref<64x128xf32, #tpu.memory_space<vmem>>, vector<64x128xf32>,
    return
  }
}

</mosaic_0001>

<bundles_post_ra>
// kernel: tpu_custom_call.1
= control target key start
LH: loop header
LB: loop body
LE: loop exit
PB: predicated region body
PF: predicated region fallthrough
CT: control target
= control target key end

     0   :  { %11 = vsyncpa [#allocation3], 0  ;;  %s1413_s0 = inlined_call_operand.hbm [shape: bf16[64,64], index: 0, kind: input, shape index: {}]   ;;  %s1414_s1 = inlined_call_operand.hbm [shape: bf16[64,128], index: 1, kind: input, shape index: {}]   ;;  %s1415_s2 = inlined_call_operand.hbm [shape: f32[256,128], index: 2, kind: input, shape index: {}]   ;;  %s1416_s3 = inlined_call_operand.vmem [shape: f32[1,128], index: 3, kind: input, shape index: {}]   ;;  %s1417_s4 = inlined_call_operand.hbm [shape: f32[256,128], index: 4, kind: input, shape index: {}]   ;;  %s1418_s5 = inlined_call_operand.vmem [shape: f32[1,128], index: 5, kind: input, shape index: {}]   ;;  %s1419_s6 = inlined_call_operand.hbm [shape: f32[64,128], index: 6, kind: output, shape index: {}]  }
   0x1   :  { %12 = vsyncpa [#allocation6], 0 }
   0x2   :  { %13 = vsyncpa [#allocation9], 0 }
   0x3   :  { %14 = vsyncpa [#allocation4], 0  ;;  %s1114_s21 = smov [#allocation5]   ;;  %s1115_s23 = smov [#allocation2]  }
   0x4   :  { %s32_s22 = sshll.u32 %s1114_s21, 4  ;;  %s20_s24 = sshll.u32 %s1115_s23, 4  ;;  %s33_s22 = int_to_ptr.vmem [resolvable:$true] %s32_s22  ;;  %s1159_s24 = int_to_ptr.vmem [resolvable:$true] %s20_s24 }
   0x5   :  { %s996_s27 = scalar_lea.hbm %s1414_s1, 512 }
   0x6   :  { %p997_p0 = scmp.ne.s32.totalorder %s1414_s1, %s996_s27  ;;  %p1000_p1 = scmp.lt.u32.totalorder %s996_s27, %s1414_s1 }
   0x8   :  { %p1002_p2 = pnand %p1000_p1, %p997_p0 }
   0xa   :  { %1005 = shalt.err (!%p1002_p2)
}
   0xb   :  { %s1006_s8 = scalar_lea.vmem %s33_s22, 512  ;;  %p1011_p4 = scmp.lt.s32.totalorder %s33_s22, %s33_s22 }
   0xc   :  { %p1007_p3 = scmp.ne.s32.totalorder %s33_s22, %s1006_s8  ;;  %p1012_p5 = scmp.lt.s32.totalorder %s1006_s8, %s1006_s8 }
   0xe   :  { %p1013_p6 = por %p1012_p5, %p1011_p4 }
  0x10   :  { %p1014_p7 = pnand %p1013_p6, %p1007_p3 }
  0x12   :  { %1017 = shalt.err (!%p1014_p7)
}
  0x13   :  { %s1116_s9 = smov 64   ;;  %s1117_s10 = smov 4  }
  0x14   :  { %38 = dma.hbm_to_vmem [thread:$0]  %s1414_s1, 512, %s33_s22, [#allocation6], %s1116_s9, %s1116_s9, %s1117_s10  }
  0x15   :  { %s1018_s15 = scalar_lea.hbm %s1413_s0, 512 }
  0x16   :  { %p1019_p8 = scmp.ne.s32.totalorder %s1413_s0, %s1018_s15  ;;  %p1022_p9 = scmp.lt.u32.totalorder %s1018_s15, %s1413_s0 }
  0x18   :  { %p1024_p10 = pnand %p1022_p9, %p1019_p8 }
  0x1a   :  { %1027 = shalt.err (!%p1024_p10)
}
  0x1b   :  { %s1028_s20 = scalar_lea.vmem %s1159_s24, 512  ;;  %p1033_p12 = scmp.lt.s32.totalorder %s1159_s24, %s1159_s24 }
  0x1c   :  { %p1029_p11 = scmp.ne.s32.totalorder %s1159_s24, %s1028_s20  ;;  %p1034_p13 = scmp.lt.s32.totalorder %s1028_s20, %s1028_s20 }
  0x1e   :  { %p1035_p0 = por %p1034_p13, %p1033_p12 }
  0x20   :  { %p1036_p1 = pnand %p1035_p0, %p1029_p11 }
  0x22   :  { %1039 = shalt.err (!%p1036_p1)
}
  0x23   :  { %26 = dma.hbm_to_vmem [thread:$0]  %s1413_s0, 512, %s1159_s24, [#allocation3], %s1116_s9, %s1116_s9, %s1117_s10  }
  0x24   :  { %s1118_s22 = smov [#allocation7]   ;;  %s1040_s27 = scalar_lea.hbm %s1415_s2, 4096 }
  0x25   :  { %s44_s23 = sshll.u32 %s1118_s22, 4  ;;  %p1041_p2 = scmp.ne.s32.totalorder %s1415_s2, %s1040_s27  ;;  %s45_s23 = int_to_ptr.vmem [resolvable:$true] %s44_s23 }
  0x26   :  { %p1044_p3 = scmp.lt.u32.totalorder %s1040_s27, %s1415_s2 }
  0x28   :  { %p1046_p4 = pnand %p1044_p3, %p1041_p2 }
  0x2a   :  { %1049 = shalt.err (!%p1046_p4)
}
  0x2b   :  { %s1050_s8 = scalar_lea.vmem %s45_s23, 4096  ;;  %p1055_p6 = scmp.lt.s32.totalorder %s45_s23, %s45_s23 }
  0x2c   :  { %p1051_p5 = scmp.ne.s32.totalorder %s45_s23, %s1050_s8  ;;  %p1056_p7 = scmp.lt.s32.totalorder %s1050_s8, %s1050_s8 }
  0x2e   :  { %p1057_p8 = por %p1056_p7, %p1055_p6 }
  0x30   :  { %p1058_p9 = pnand %p1057_p8, %p1051_p5 }
  0x32   :  { %1061 = shalt.err (!%p1058_p9)
}
  0x33   :  { %s1119_s0 = smov 128   ;;  %s1120_s24 = smov 8  }
  0x34   :  { %50 = dma.hbm_to_vmem [thread:$0]  %s1415_s2, 4096, %s45_s23, [#allocation6], %s1119_s0, %s1119_s0, %s1120_s24  }
  0x35   :  { %s1121_s11 = smov [#allocation8]   ;;  %s1062_s15 = scalar_lea.hbm %s1417_s4, 4096 }
  0x36   :  { %s58_s12 = sshll.u32 %s1121_s11, 4  ;;  %p1063_p10 = scmp.ne.s32.totalorder %s1417_s4, %s1062_s15  ;;  %s59_s12 = int_to_ptr.vmem [resolvable:$true] %s58_s12 }
  0x37   :  { %p1066_p11 = scmp.lt.u32.totalorder %s1062_s15, %s1417_s4 }
  0x39   :  { %p1068_p12 = pnand %p1066_p11, %p1063_p10 }
  0x3b   :  { %1071 = shalt.err (!%p1068_p12)
}
  0x3c   :  { %s1072_s20 = scalar_lea.vmem %s59_s12, 4096  ;;  %p1077_p0 = scmp.lt.s32.totalorder %s59_s12, %s59_s12 }
  0x3d   :  { %p1073_p13 = scmp.ne.s32.totalorder %s59_s12, %s1072_s20  ;;  %p1078_p1 = scmp.lt.s32.totalorder %s1072_s20, %s1072_s20 }
  0x3f   :  { %p1079_p2 = por %p1078_p1, %p1077_p0 }
  0x41   :  { %p1080_p3 = pnand %p1079_p2, %p1073_p13 }
  0x43   :  { %1083 = shalt.err (!%p1080_p3)
}
  0x44   :  { %64 = dma.hbm_to_vmem [thread:$0]  %s1417_s4, 4096, %s59_s12, [#allocation9], %s1119_s0, %s1119_s0, %s1120_s24  }
  0x45   :  { %1106 = dma.done.wait [#allocation3], 512  }
  0x46   :  { %1107 = vsyncadd [#allocation3], 4294966784 }
  0x47   :  { %1108 = dma.done.wait [#allocation6], 4608  }
  0x48   :  { %1109 = vsyncadd [#allocation6], 4294962688 }
  0x49   :  { %1110 = dma.done.wait [#allocation9], 4096  }
  0x4a   :  { %1111 = vsyncadd [#allocation9], 4294963200  ;;  %v1220_v0 = vld [vmem:[#allocation5] sm:$0xff]   ;;  %v1222_v1 = vld [vmem:[#allocation5 + $0x8] sm:$0xff]   ;;  %vm140_vm0 = vcmask 523264   ;;  %v1122_v8 = vmov 16  }
  0x4b   :  { %v1224_v2 = vld [vmem:[#allocation5 + $0x10] sm:$0xff]   ;;  %v972_v3 = vld [vmem:[#allocation2] sm:$0xff]   ;;  %860 = vmatprep.subr.bf16.mxu1 %v1220_v0  ;;  %v1231_v4 = vld [vmem:[#allocation5 + $0x18] sm:$0xff]   ;;  %967 = vset.pattern.permute.xlu1 %v1122_v8 }
  0x4c   :  { %861 = vmatpush3.bf16.msra.mxu1 %v1220_v0  ;;  %868 = vmatprep.mubr.msk.bf16.mxu1 %vm140_vm0, %v972_v3  ;;  %v1237_v5 = vld [vmem:[#allocation2 + $0x8] sm:$0xff]   ;;  %v1240_v6 = vld [vmem:[#allocation2 + $0x10] sm:$0xff]   ;;  %v1246_v7 = vld [vmem:[#allocation2 + $0x18] sm:$0xff]  }
  0x4d   :  { %862 = vmatprep.subr.bf16.mxu1 %v1222_v1  ;;  %884 = vmatprep.mubr.msk.bf16.mxu0 %vm140_vm0, %v972_v3  ;;  %v330_v9 = vld [vmem:[#allocation7 + $0x80] sm:$0xff]  ;;  %v331_v10 = vld [vmem:[#allocation7 + $0x88] sm:$0xff]  ;;  %v332_v14 = vld [vmem:[#allocation7 + $0x90] sm:$0xff] }
  0x4e   :  { %966 = vset.pattern.permute.xlu0 %v1122_v8  ;;  %v314_v11 = vld [vmem:[#allocation7] sm:$0xff]  ;;  %v892_v12 = vpack.c.bf16 %v331_v10, %v330_v9  ;;  %v315_v13 = vld [vmem:[#allocation7 + $0x8] sm:$0xff]  ;;  %v333_v15 = vld [vmem:[#allocation7 + $0x98] sm:$0xff] }
  0x4f   :  { %v894_v16 = vpack.c.bf16 %v315_v13, %v314_v11  ;;  %v896_v17 = vpack.c.bf16 %v333_v15, %v332_v14  ;;  %v316_v18 = vld [vmem:[#allocation7 + $0x10] sm:$0xff]  ;;  %v317_v19 = vld [vmem:[#allocation7 + $0x18] sm:$0xff]  ;;  %v334_v20 = vld [vmem:[#allocation7 + $0xa0] sm:$0xff] }
  0x50   :  { %863 = vmatpush3.bf16.msra.mxu1 %v1222_v1  ;;  %v335_v21 = vld [vmem:[#allocation7 + $0xa8] sm:$0xff]  ;;  %v898_v22 = vpack.c.bf16 %v317_v19, %v316_v18  ;;  %v318_v24 = vld [vmem:[#allocation7 + $0x20] sm:$0xff]  ;;  %v336_v26 = vld [vmem:[#allocation7 + $0xb0] sm:$0xff] }
  0x51   :  { %864 = vmatprep.subr.bf16.mxu1 %v1224_v2  ;;  %v900_v23 = vpack.c.bf16 %v335_v21, %v334_v20  ;;  %v319_v25 = vld [vmem:[#allocation7 + $0x28] sm:$0xff]  ;;  %v337_v27 = vld [vmem:[#allocation7 + $0xb8] sm:$0xff]  ;;  %v320_v30 = vld [vmem:[#allocation7 + $0x30] sm:$0xff] }
  0x52   :  { %v902_v28 = vpack.c.bf16 %v319_v25, %v318_v24  ;;  %v904_v29 = vpack.c.bf16 %v337_v27, %v336_v26  ;;  %v321_v31 = vld [vmem:[#allocation7 + $0x38] sm:$0xff]  ;;  %v338_v32 = vld [vmem:[#allocation7 + $0xc0] sm:$0xff]  ;;  %v339_v33 = vld [vmem:[#allocation7 + $0xc8] sm:$0xff] }
  0x53   :  { %v906_v34 = vpack.c.bf16 %v321_v31, %v320_v30  ;;  %v908_v35 = vpack.c.bf16 %v339_v33, %v338_v32  ;;  %v322_v36 = vld [vmem:[#allocation7 + $0x40] sm:$0xff]  ;;  %v323_v37 = vld [vmem:[#allocation7 + $0x48] sm:$0xff]  ;;  %v340_v38 = vld [vmem:[#allocation7 + $0xd0] sm:$0xff]  ;;  %v306_v32 = vunpack.c.l.bf16 %v1220_v0 }
  0x54   :  { %865 = vmatpush3.bf16.msra.mxu1 %v1224_v2  ;;  %v341_v39 = vld [vmem:[#allocation7 + $0xd8] sm:$0xff]  ;;  %v910_v40 = vpack.c.bf16 %v323_v37, %v322_v36  ;;  %v324_v42 = vld [vmem:[#allocation7 + $0x50] sm:$0xff]  ;;  %v342_v44 = vld [vmem:[#allocation7 + $0xe0] sm:$0xff]  ;;  %v307_v36 = vunpack.c.h.bf16 %v1220_v0 }
  0x55   :  { %866 = vmatprep.subr.bf16.mxu1 %v1231_v4  ;;  %v912_v41 = vpack.c.bf16 %v341_v39, %v340_v38  ;;  %v325_v43 = vld [vmem:[#allocation7 + $0x58] sm:$0xff]  ;;  %v343_v45 = vld [vmem:[#allocation7 + $0xe8] sm:$0xff]  ;;  %v326_v48 = vld [vmem:[#allocation7 + $0x60] sm:$0xff] }
  0x56   :  { %v914_v46 = vpack.c.bf16 %v325_v43, %v324_v42  ;;  %v916_v47 = vpack.c.bf16 %v343_v45, %v342_v44  ;;  %v327_v49 = vld [vmem:[#allocation7 + $0x68] sm:$0xff]  ;;  %v344_v10 = vld [vmem:[#allocation7 + $0xf0] sm:$0xff]  ;;  %v345_v11 = vld [vmem:[#allocation7 + $0xf8] sm:$0xff]  ;;  %v309_v43 = vunpack.c.h.bf16 %v1222_v1 }
  0x57   :  { %v918_v50 = vpack.c.bf16 %v327_v49, %v326_v48  ;;  %v920_v13 = vpack.c.bf16 %v345_v11, %v344_v10  ;;  %v328_v14 = vld [vmem:[#allocation7 + $0x70] sm:$0xff]  ;;  %v329_v15 = vld [vmem:[#allocation7 + $0x78] sm:$0xff]  ;;  %v311_v49 = vunpack.c.h.bf16 %v1224_v2 }
  0x58   :  { %867 = vmatpush3.bf16.msra.mxu1 %v1231_v4  ;;  %v922_v18 = vpack.c.bf16 %v329_v15, %v328_v14 }
  0x59   :  { %893 = vmatprep.subr.bf16.mxu1 %v892_v12 }
  0x5b   :  { %869 = vmatmul.mubr.msk.bf16.vlgmr.msra.gmra.mrb[0].mxu1 %vm140_vm0, %v1237_v5 }
  0x5c   :  { %872 = vmatprep.mubr.msk.bf16.mxu1 %vm140_vm0, %v1240_v6  ;;  %895 = vmatpush3.bf16.msra.mxu1 %v894_v16 }
  0x5d   :  { %897 = vmatprep.subr.bf16.mxu1 %v896_v17 }
  0x60   :  { %899 = vmatpush3.bf16.msra.mxu1 %v898_v22 }
  0x61   :  { %901 = vmatprep.subr.bf16.mxu1 %v900_v23 }
  0x63   :  { %873 = vmatmul.mubr.msk.bf16.gmra.mrb[4].mxu1 %vm140_vm0, %v1246_v7 }
  0x64   :  { %903 = vmatpush3.bf16.msra.mxu1 %v902_v28 }
  0x65   :  { %905 = vmatprep.subr.bf16.mxu1 %v904_v29 }
  0x68   :  { %907 = vmatpush3.bf16.msra.mxu1 %v906_v34 }
  0x69   :  { %909 = vmatprep.subr.bf16.mxu1 %v908_v35 }
  0x6c   :  { %911 = vmatpush3.bf16.msra.mxu1 %v910_v40 }
  0x6d   :  { %913 = vmatprep.subr.bf16.mxu1 %v912_v41  ;;  %v308_v41 = vunpack.c.l.bf16 %v1222_v1 }
  0x70   :  { %915 = vmatpush3.bf16.msra.mxu1 %v914_v46  ;;  %v310_v46 = vunpack.c.l.bf16 %v1224_v2 }
  0x71   :  { %917 = vmatprep.subr.bf16.mxu1 %v916_v47 }
  0x74   :  { %919 = vmatpush3.bf16.msra.mxu1 %v918_v50 }
  0x75   :  { %921 = vmatprep.subr.bf16.mxu1 %v920_v13 }
  0x78   :  { %923 = vmatpush3.bf16.msra.mxu1 %v922_v18 }
 0x12e   :  { %v1250_v51 = vpop.f32.mrb[0].mxu1 }
 0x12f   :  { %v228_v52 = vmax.f32 %v1250_v51, 1.0  ;;  %v1253_v53 = vpop.f32.mrb[1].mxu1  ;;  %vm220_vm1 = vcmp.gt.f32.partialorder %v1250_v51, 0.0 }
 0x130   :  { %v226_v54 = vmax.f32 %v1253_v53, 1.0  ;;  %v1256_v55 = vpop.f32.mrb[2].mxu1  ;;  %vm218_vm2 = vcmp.gt.f32.partialorder %v1253_v53, 0.0 }
 0x131   :  { %980 = vrcp.f32 %v228_v52  ;;  %v229_v56 = vmax.f32 %v1256_v55, 1.0  ;;  %v1259_v57 = vpop.f32.mrb[3].mxu1  ;;  %vm221_vm3 = vcmp.gt.f32.partialorder %v1256_v55, 0.0 }
 0x132   :  { %982 = vrcp.f32 %v226_v54  ;;  %v227_v58 = vmax.f32 %v1259_v57, 1.0  ;;  %vm219_vm4 = vcmp.gt.f32.partialorder %v1259_v57, 0.0 }
 0x133   :  { %984 = vrcp.f32 %v229_v56  ;;  %v726_v56 = vld [vmem:[%s1416_s3] ss:$0 sm:$0xff] }
 0x134   :  { %986 = vrcp.f32 %v227_v58 }
 0x136   :  { %v1262_v59 = vpop.f32.mrb[4].mxu1 }
 0x137   :  { %v232_v60 = vmax.f32 %v1262_v59, 1.0  ;;  %v1265_v61 = vpop.f32.mrb[5].mxu1  ;;  %vm224_vm7 = vcmp.gt.f32.partialorder %v1262_v59, 0.0 }
 0x138   :  { %v230_v62 = vmax.f32 %v1265_v61, 1.0  ;;  %v1268_v63 = vpop.f32.mrb[6].mxu1  ;;  %vm222_vm5 = vcmp.gt.f32.partialorder %v1265_v61, 0.0 }
 0x139   :  { %v1270_v3 = vpop.f32.mrb[7].mxu1  ;;  %v233_v8 = vmax.f32 %v1268_v63, 1.0  ;;  %vm225_vm8 = vcmp.gt.f32.partialorder %v1268_v63, 0.0 }
 0x13a   :  { %988 = vrcp.f32 %v230_v62  ;;  %v231_v9 = vmax.f32 %v1270_v3, 1.0  ;;  %vm223_vm6 = vcmp.gt.f32.partialorder %v1270_v3, 0.0 }
 0x13b   :  { %v981_v12 = vpop.eup %980  ;;  %990 = vrcp.f32 %v232_v60 }
 0x13c   :  { %v983_v16 = vpop.eup %982  ;;  %992 = vrcp.f32 %v231_v9  ;;  %v252_v17 = vsel %vm220_vm1, %v981_v12, 0.0 }
 0x13d   :  { %v985_v19 = vpop.eup %984  ;;  %270 = vperm.xlu1 %967, %v252_v17   ;;  %v250_v20 = vsel %vm218_vm2, %v983_v16, 0.0  ;;  %994 = vrcp.f32 %v233_v8 }
 0x13e   :  { %v987_v21 = vpop.eup %986  ;;  %260 = vperm.xlu0 %966, %v250_v20   ;;  %v253_v22 = vsel %vm221_vm3, %v985_v19, 0.0 }
 0x13f   :  { %v251_v23 = vsel %vm219_vm4, %v987_v21, 0.0 }
 0x141   :  { %275 = vperm.xlu1 %967, %v253_v22  }
 0x142   :  { %265 = vperm.xlu0 %966, %v251_v23  }
 0x144   :  { %v989_v24 = vpop.eup %988 }
 0x145   :  { %v991_v25 = vpop.eup %990  ;;  %v254_v26 = vsel %vm222_vm5, %v989_v24, 0.0 }
 0x146   :  { %v993_v27 = vpop.eup %992  ;;  %280 = vperm.xlu0 %966, %v254_v26   ;;  %v256_v30 = vsel %vm224_vm7, %v991_v25, 0.0 }
 0x147   :  { %v255_v28 = vsel %vm223_vm6, %v993_v27, 0.0  ;;  %v995_v29 = vpop.eup %994 }
 0x148   :  { %285 = vperm.xlu1 %967, %v255_v28   ;;  %v257_v31 = vsel %vm225_vm8, %v995_v29, 0.0 }
 0x14a   :  { %290 = vperm.xlu0 %966, %v256_v30  }
 0x14c   :  { %295 = vperm.xlu1 %967, %v257_v31  }
 0x1bc   :  { %v1287_v35 = vpop.permute.xlu1 %270 }
 0x1bd   :  { %v1283_v33 = vpop.permute.xlu0 %260  ;;  %v300_v39 = vmul.f32 %v1250_v51, %v1287_v35  ;;  %v312_v51 = vunpack.c.l.bf16 %v1231_v4 }
 0x1be   :  { %v298_v34 = vmul.f32 %v1283_v33, %v1253_v53  ;;  %v313_v53 = vunpack.c.h.bf16 %v1231_v4 }
 0x1c0   :  { %417 = vmatprep.mubr.f32.mxu1 %v298_v34  ;;  %v1296_v40 = vpop.permute.xlu1 %275 }
 0x1c1   :  { %418 = vmatmul.mubr.f32.vlgmr.msra.gmra.mrb[8].mxu1 %v306_v32  ;;  %v1290_v37 = vpop.permute.xlu0 %265  ;;  %v301_v42 = vmul.f32 %v1256_v55, %v1296_v40 }
 0x1c2   :  { %v299_v38 = vmul.f32 %v1290_v37, %v1259_v57 }
 0x1c4   :  { %422 = vmatprep.mubr.f32.mxu1 %v299_v38 }
 0x1c5   :  { %423 = vmatmul.mubr.f32.gmra.mrb[10].mxu1 %v307_v36  ;;  %v1301_v0 = vpop.permute.xlu0 %280 }
 0x1c6   :  { %427 = vmatprep.mubr.f32.mxu1 %v300_v39  ;;  %v302_v44 = vmul.f32 %v1301_v0, %v1265_v61 }
 0x1c7   :  { %v1306_v45 = vpop.permute.xlu1 %285 }
 0x1c8   :  { %v303_v47 = vmul.f32 %v1306_v45, %v1270_v3 }
 0x1c9   :  { %428 = vmatmul.mubr.f32.gmra.mrb[12].mxu1 %v308_v41  ;;  %v1311_v48 = vpop.permute.xlu0 %290  ;;  %v559_v41 = vld [vmem:[#allocation8 + $0x80] sm:$0xff] }
 0x1ca   :  { %432 = vmatprep.mubr.f32.mxu1 %v301_v42  ;;  %v304_v1 = vmul.f32 %v1262_v59, %v1311_v48  ;;  %v560_v42 = vld [vmem:[#allocation8 + $0x88] sm:$0xff] }
 0x1cb   :  { %v1316_v50 = vpop.permute.xlu1 %295 }
 0x1cc   :  { %v305_v52 = vmul.f32 %v1268_v63, %v1316_v50 }
 0x1cd   :  { %433 = vmatmul.mubr.f32.gmra.mrb[14].mxu1 %v309_v43 }
 0x1ce   :  { %437 = vmatprep.mubr.f32.mxu1 %v302_v44 }
 0x1d1   :  { %438 = vmatmul.mubr.f32.gmra.mrb[16].mxu1 %v310_v46 }
 0x1d2   :  { %442 = vmatprep.mubr.f32.mxu1 %v303_v47  ;;  %v924_v47 = vpack.c.bf16 %v560_v42, %v559_v41  ;;  %v555_v41 = vld [vmem:[#allocation8 + $0x60] sm:$0xff]  ;;  %v556_v42 = vld [vmem:[#allocation8 + $0x68] sm:$0xff] }
 0x1d5   :  { %443 = vmatmul.mubr.f32.gmra.mrb[18].mxu1 %v311_v49  ;;  %v543_v49 = vld [vmem:[#allocation8] sm:$0xff] }
 0x1d6   :  { %447 = vmatprep.mubr.f32.mxu1 %v304_v1  ;;  %v544_v1 = vld [vmem:[#allocation8 + $0x8] sm:$0xff] }
 0x1d9   :  { %448 = vmatmul.mubr.f32.gmra.mrb[20].mxu1 %v312_v51  ;;  %v561_v51 = vld [vmem:[#allocation8 + $0x90] sm:$0xff] }
 0x1da   :  { %452 = vmatprep.mubr.f32.mxu1 %v305_v52  ;;  %v562_v52 = vld [vmem:[#allocation8 + $0x98] sm:$0xff] }
 0x1dd   :  { %453 = vmatmul.mubr.f32.gmra.mrb[22].mxu1 %v313_v53  ;;  %v926_v53 = vpack.c.bf16 %v544_v1, %v543_v49  ;;  %v574_v49 = vld [vmem:[#allocation8 + $0xf8] sm:$0xff] }
 0x294   :  { %v772_v54 = vpop.f32.mrb[8].mxu1 }
 0x295   :  { %v773_v2 = vpop.f32.mrb[9].mxu1 }
 0x296   :  { %v774_v55 = vadd.f32 %v773_v2, %v772_v54  ;;  %v928_v54 = vpack.c.bf16 %v562_v52, %v561_v51  ;;  %v545_v2 = vld [vmem:[#allocation8 + $0x10] sm:$0xff]  ;;  %v558_v52 = vld [vmem:[#allocation8 + $0x78] sm:$0xff] }
 0x297   :  { %v557_v51 = vld [vmem:[#allocation8 + $0x70] sm:$0xff] }
 0x298   :  { %v775_v57 = vpop.f32.mrb[10].mxu1  ;;  %v1325_v59 = vadd.f32 %v774_v55, %v726_v56  ;;  %v546_v55 = vld [vmem:[#allocation8 + $0x18] sm:$0xff] }
 0x299   :  { %v776_v58 = vpop.f32.mrb[11].mxu1 }
 0x29a   :  { %v777_v60 = vadd.f32 %v776_v58, %v775_v57  ;;  %v458_v4 = vmax.f32 %v1325_v59, 0.0  ;;  %v564_v57 = vld [vmem:[#allocation8 + $0xa8] sm:$0xff]  ;;  %v930_v58 = vpack.c.bf16 %v546_v55, %v545_v2 }
 0x29c   :  { %v1327_v61 = vadd.f32 %v777_v60, %v726_v56  ;;  %v778_v62 = vpop.f32.mrb[12].mxu1 }
 0x29d   :  { %v779_v63 = vpop.f32.mrb[13].mxu1 }
 0x29e   :  { %v459_v3 = vmax.f32 %v1327_v61, 0.0  ;;  %v780_v8 = vadd.f32 %v779_v63, %v778_v62  ;;  %v547_v62 = vld [vmem:[#allocation8 + $0x20] sm:$0xff]  ;;  %v548_v63 = vld [vmem:[#allocation8 + $0x28] sm:$0xff] }
 0x2a0   :  { %v781_v9 = vpop.f32.mrb[14].mxu1  ;;  %v466_v10 = vpack.c.bf16 %v459_v3, %v458_v4  ;;  %v1335_v12 = vadd.f32 %v780_v8, %v726_v56  ;;  %v565_v8 = vld [vmem:[#allocation8 + $0xb0] sm:$0xff] }
 0x2a1   :  { %v782_v11 = vpop.f32.mrb[15].mxu1 }
 0x2a2   :  { %v783_v13 = vadd.f32 %v782_v11, %v781_v9  ;;  %876 = vmatprep.subr.bf16.mxu0 %v466_v10  ;;  %v460_v17 = vmax.f32 %v1335_v12, 0.0  ;;  %v566_v9 = vld [vmem:[#allocation8 + $0xb8] sm:$0xff] }
 0x2a3   :  { %877 = vmatpush3.bf16.msra.mxu0 %v466_v10  ;;  %v934_v10 = vpack.c.bf16 %v548_v63, %v547_v62  ;;  %v936_v11 = vpack.c.bf16 %v566_v9, %v565_v8 }
 0x2a4   :  { %v1337_v14 = vadd.f32 %v783_v13, %v726_v56  ;;  %v784_v15 = vpop.f32.mrb[16].mxu1  ;;  %v549_v13 = vld [vmem:[#allocation8 + $0x30] sm:$0xff] }
 0x2a5   :  { %v785_v16 = vpop.f32.mrb[17].mxu1 }
 0x2a6   :  { %v461_v18 = vmax.f32 %v1337_v14, 0.0  ;;  %v786_v19 = vadd.f32 %v785_v16, %v784_v15  ;;  %v550_v15 = vld [vmem:[#allocation8 + $0x38] sm:$0xff]  ;;  %v567_v16 = vld [vmem:[#allocation8 + $0xc0] sm:$0xff] }
 0x2a8   :  { %v787_v20 = vpop.f32.mrb[18].mxu1  ;;  %v467_v21 = vpack.c.bf16 %v461_v18, %v460_v17  ;;  %v1345_v23 = vadd.f32 %v786_v19, %v726_v56  ;;  %v568_v19 = vld [vmem:[#allocation8 + $0xc8] sm:$0xff] }
 0x2a9   :  { %v788_v22 = vpop.f32.mrb[19].mxu1 }
 0x2aa   :  { %v789_v24 = vadd.f32 %v788_v22, %v787_v20  ;;  %878 = vmatprep.subr.bf16.mxu0 %v467_v21  ;;  %v462_v28 = vmax.f32 %v1345_v23, 0.0  ;;  %v551_v20 = vld [vmem:[#allocation8 + $0x40] sm:$0xff]  ;;  %v569_v22 = vld [vmem:[#allocation8 + $0xd0] sm:$0xff] }
 0x2ab   :  { %879 = vmatpush3.bf16.msra.mxu0 %v467_v21  ;;  %v552_v21 = vld [vmem:[#allocation8 + $0x48] sm:$0xff] }
 0x2ac   :  { %v1347_v25 = vadd.f32 %v789_v24, %v726_v56  ;;  %v790_v26 = vpop.f32.mrb[20].mxu1  ;;  %v570_v24 = vld [vmem:[#allocation8 + $0xd8] sm:$0xff] }
 0x2ad   :  { %v791_v27 = vpop.f32.mrb[21].mxu1 }
 0x2ae   :  { %v463_v29 = vmax.f32 %v1347_v25, 0.0  ;;  %v792_v30 = vadd.f32 %v791_v27, %v790_v26  ;;  %v942_v26 = vpack.c.bf16 %v552_v21, %v551_v20  ;;  %v944_v27 = vpack.c.bf16 %v570_v24, %v569_v22 }
 0x2b0   :  { %v793_v31 = vpop.f32.mrb[22].mxu1  ;;  %v468_v32 = vpack.c.bf16 %v463_v29, %v462_v28  ;;  %v1355_v36 = vadd.f32 %v792_v30, %v726_v56  ;;  %v553_v30 = vld [vmem:[#allocation8 + $0x50] sm:$0xff] }
 0x2b1   :  { %v794_v34 = vpop.f32.mrb[23].mxu1 }
 0x2b2   :  { %v795_v38 = vadd.f32 %v794_v34, %v793_v31  ;;  %880 = vmatprep.subr.bf16.mxu0 %v468_v32  ;;  %v464_v43 = vmax.f32 %v1355_v36, 0.0  ;;  %v554_v31 = vld [vmem:[#allocation8 + $0x58] sm:$0xff]  ;;  %v572_v34 = vld [vmem:[#allocation8 + $0xe8] sm:$0xff] }
 0x2b3   :  { %881 = vmatpush3.bf16.msra.mxu0 %v468_v32  ;;  %v571_v32 = vld [vmem:[#allocation8 + $0xe0] sm:$0xff] }
 0x2b4   :  { %v1357_v39 = vadd.f32 %v795_v38, %v726_v56  ;;  %v563_v56 = vld [vmem:[#allocation8 + $0xa0] sm:$0xff]  ;;  %v946_v38 = vpack.c.bf16 %v554_v31, %v553_v30 }
 0x2b5   :  { %v932_v60 = vpack.c.bf16 %v564_v57, %v563_v56 }
 0x2b6   :  { %v465_v44 = vmax.f32 %v1357_v39, 0.0 }
 0x2b8   :  { %v469_v46 = vpack.c.bf16 %v465_v44, %v464_v43 }
 0x2ba   :  { %882 = vmatprep.subr.bf16.mxu0 %v469_v46 }
 0x2bb   :  { %883 = vmatpush3.bf16.msra.mxu0 %v469_v46  ;;  %v950_v46 = vpack.c.bf16 %v556_v42, %v555_v41 }
 0x2bc   :  { %925 = vmatprep.subr.bf16.mxu0 %v924_v47  ;;  %v573_v47 = vld [vmem:[#allocation8 + $0xf0] sm:$0xff] }
 0x2bd   :  { %v952_v1 = vpack.c.bf16 %v574_v49, %v573_v47 }
 0x2be   :  { %885 = vmatmul.mubr.msk.bf16.vlgmr.msra.gmra.mrb[0].mxu0 %vm140_vm0, %v1237_v5  ;;  %v938_v5 = vpack.c.bf16 %v550_v15, %v549_v13 }
 0x2bf   :  { %888 = vmatprep.mubr.msk.bf16.mxu0 %vm140_vm0, %v1240_v6  ;;  %927 = vmatpush3.bf16.msra.mxu0 %v926_v53  ;;  %v940_v6 = vpack.c.bf16 %v568_v19, %v567_v16  ;;  %v954_v53 = vpack.c.bf16 %v558_v52, %v557_v51 }
 0x2c0   :  { %929 = vmatprep.subr.bf16.mxu0 %v928_v54 }
 0x2c3   :  { %931 = vmatpush3.bf16.msra.mxu0 %v930_v58 }
 0x2c4   :  { %933 = vmatprep.subr.bf16.mxu0 %v932_v60 }
 0x2c6   :  { %889 = vmatmul.mubr.msk.bf16.gmra.mrb[4].mxu0 %vm140_vm0, %v1246_v7  ;;  %v948_v7 = vpack.c.bf16 %v572_v34, %v571_v32 }
 0x2c7   :  { %935 = vmatpush3.bf16.msra.mxu0 %v934_v10 }
 0x2c8   :  { %937 = vmatprep.subr.bf16.mxu0 %v936_v11 }
 0x2cb   :  { %939 = vmatpush3.bf16.msra.mxu0 %v938_v5 }
 0x2cc   :  { %941 = vmatprep.subr.bf16.mxu0 %v940_v6 }
 0x2cf   :  { %943 = vmatpush3.bf16.msra.mxu0 %v942_v26 }
 0x2d0   :  { %945 = vmatprep.subr.bf16.mxu0 %v944_v27 }
 0x2d3   :  { %947 = vmatpush3.bf16.msra.mxu0 %v946_v38 }
 0x2d4   :  { %949 = vmatprep.subr.bf16.mxu0 %v948_v7 }
 0x2d7   :  { %951 = vmatpush3.bf16.msra.mxu0 %v950_v46 }
 0x2d8   :  { %953 = vmatprep.subr.bf16.mxu0 %v952_v1 }
 0x2db   :  { %955 = vmatpush3.bf16.msra.mxu0 %v954_v53 }
 0x391   :  { %v886_v54 = vpop.f32.mrb[0].mxu0 }
 0x392   :  { %v504_v2 = vpop.f32.mrb[1].mxu0  ;;  %v537_v60 = vmul.f32 %v886_v54, %v1287_v35 }
 0x393   :  { %v535_v55 = vmul.f32 %v504_v2, %v1283_v33  ;;  %v887_v56 = vpop.f32.mrb[2].mxu0 }
 0x394   :  { %v507_v57 = vpop.f32.mrb[3].mxu0  ;;  %v538_v33 = vmul.f32 %v887_v56, %v1296_v40 }
 0x395   :  { %v536_v58 = vmul.f32 %v507_v57, %v1290_v37  ;;  %646 = vmatprep.mubr.f32.mxu0 %v535_v55 }
 0x396   :  { %647 = vmatmul.mubr.f32.vlgmr.msra.gmra.mrb[8].mxu0 %v458_v4 }
 0x397   :  { %651 = vmatprep.mubr.f32.mxu0 %v536_v58 }
 0x399   :  { %v890_v62 = vpop.f32.mrb[4].mxu0 }
 0x39a   :  { %v520_v63 = vpop.f32.mrb[5].mxu0  ;;  %652 = vmatmul.mubr.f32.gmra.mrb[10].mxu0 %v459_v3  ;;  %v541_v59 = vmul.f32 %v890_v62, %v1311_v48 }
 0x39b   :  { %v891_v8 = vpop.f32.mrb[6].mxu0  ;;  %656 = vmatprep.mubr.f32.mxu0 %v537_v60  ;;  %v539_v37 = vmul.f32 %v520_v63, %v1301_v0 }
 0x39c   :  { %v523_v9 = vpop.f32.mrb[7].mxu0  ;;  %v542_v40 = vmul.f32 %v891_v8, %v1316_v50 }
 0x39d   :  { %v540_v35 = vmul.f32 %v523_v9, %v1306_v45  ;;  %v731_v45 = vld [vmem:[%s1418_s5] ss:$0 sm:$0xff]  ;;  %s1123_s5 = smov [#allocation10]  }
 0x39e   :  { %657 = vmatmul.mubr.f32.gmra.mrb[12].mxu0 %v460_v17  ;;  %s700_s23 = sshll.u32 %s1123_s5, 4  ;;  %s701_s23 = int_to_ptr.vmem [resolvable:$true] %s700_s23 }
 0x39f   :  { %661 = vmatprep.mubr.f32.mxu0 %v538_v33  ;;  %s1084_s25 = scalar_lea.vmem %s701_s23, 1024  ;;  %p1089_p5 = scmp.lt.s32.totalorder %s701_s23, %s701_s23 }
 0x3a0   :  { %p1085_p4 = scmp.ne.s32.totalorder %s701_s23, %s1084_s25  ;;  %p1090_p6 = scmp.lt.s32.totalorder %s1084_s25, %s1084_s25 }
 0x3a2   :  { %662 = vmatmul.mubr.f32.gmra.mrb[14].mxu0 %v461_v18  ;;  %p1091_p7 = por %p1090_p6, %p1089_p5 }
 0x3a3   :  { %666 = vmatprep.mubr.f32.mxu0 %v539_v37 }
 0x3a4   :  { %p1092_p8 = pnand %p1091_p7, %p1085_p4 }
 0x3a6   :  { %667 = vmatmul.mubr.f32.gmra.mrb[16].mxu0 %v462_v28 }
 0x3a7   :  { %671 = vmatprep.mubr.f32.mxu0 %v540_v35 }
 0x3aa   :  { %672 = vmatmul.mubr.f32.gmra.mrb[18].mxu0 %v463_v29 }
 0x3ab   :  { %676 = vmatprep.mubr.f32.mxu0 %v541_v59 }
 0x3ae   :  { %677 = vmatmul.mubr.f32.gmra.mrb[20].mxu0 %v464_v43 }
 0x3af   :  { %681 = vmatprep.mubr.f32.mxu0 %v542_v40 }
 0x3b2   :  { %682 = vmatmul.mubr.f32.gmra.mrb[22].mxu0 %v465_v44 }
 0x469   :  { %v836_v0 = vpop.f32.mrb[8].mxu0 }
 0x46a   :  { %v837_v61 = vpop.f32.mrb[9].mxu0 }
 0x46b   :  { %v838_v48 = vadd.f32 %v837_v61, %v836_v0 }
 0x46d   :  { %v649_v4 = vadd.f32 %v838_v48, %v731_v45  ;;  %v839_v3 = vpop.f32.mrb[10].mxu0 }
 0x46e   :  { %v840_v12 = vpop.f32.mrb[11].mxu0 }
 0x46f   :  { %687 = vst [vmem:[#allocation10] sm:$0xff] %v649_v4  ;;  %v841_v14 = vadd.f32 %v840_v12, %v839_v3 }
 0x471   :  { %v654_v50 = vadd.f32 %v841_v14, %v731_v45  ;;  %v842_v17 = vpop.f32.mrb[12].mxu0 }
 0x472   :  { %v843_v18 = vpop.f32.mrb[13].mxu0 }
 0x473   :  { %688 = vst [vmem:[#allocation10 + $0x8] sm:$0xff] %v654_v50  ;;  %v844_v23 = vadd.f32 %v843_v18, %v842_v17 }
 0x475   :  { %v659_v25 = vadd.f32 %v844_v23, %v731_v45  ;;  %v845_v28 = vpop.f32.mrb[14].mxu0 }
 0x476   :  { %v846_v29 = vpop.f32.mrb[15].mxu0 }
 0x477   :  { %689 = vst [vmem:[#allocation10 + $0x10] sm:$0xff] %v659_v25  ;;  %v847_v36 = vadd.f32 %v846_v29, %v845_v28 }
 0x479   :  { %v664_v39 = vadd.f32 %v847_v36, %v731_v45  ;;  %v848_v43 = vpop.f32.mrb[16].mxu0 }
 0x47a   :  { %v849_v44 = vpop.f32.mrb[17].mxu0 }
 0x47b   :  { %690 = vst [vmem:[#allocation10 + $0x18] sm:$0xff] %v664_v39  ;;  %v850_v10 = vadd.f32 %v849_v44, %v848_v43 }
 0x47d   :  { %v669_v11 = vadd.f32 %v850_v10, %v731_v45  ;;  %v851_v13 = vpop.f32.mrb[18].mxu0 }
 0x47e   :  { %v852_v15 = vpop.f32.mrb[19].mxu0 }
 0x47f   :  { %691 = vst [vmem:[#allocation10 + $0x20] sm:$0xff] %v669_v11  ;;  %v853_v16 = vadd.f32 %v852_v15, %v851_v13 }
 0x481   :  { %v674_v19 = vadd.f32 %v853_v16, %v731_v45  ;;  %v854_v5 = vpop.f32.mrb[20].mxu0 }
 0x482   :  { %v855_v6 = vpop.f32.mrb[21].mxu0 }
 0x483   :  { %692 = vst [vmem:[#allocation10 + $0x28] sm:$0xff] %v674_v19  ;;  %v856_v20 = vadd.f32 %v855_v6, %v854_v5 }
 0x485   :  { %v679_v21 = vadd.f32 %v856_v20, %v731_v45  ;;  %v857_v22 = vpop.f32.mrb[22].mxu0 }
 0x486   :  { %v858_v24 = vpop.f32.mrb[23].mxu0 }
 0x487   :  { %693 = vst [vmem:[#allocation10 + $0x30] sm:$0xff] %v679_v21  ;;  %v859_v26 = vadd.f32 %v858_v24, %v857_v22 }
 0x489   :  { %v684_v27 = vadd.f32 %v859_v26, %v731_v45 }
 0x48b   :  { %694 = vst [vmem:[#allocation10 + $0x38] sm:$0xff] %v684_v27 }
 0x48c   :  { %1095 = shalt.err (!%p1092_p8)
}
 0x48d   :  { %s1096_s28 = scalar_lea.hbm %s1419_s6, 1024 }
 0x48e   :  { %p1097_p9 = scmp.ne.s32.totalorder %s1419_s6, %s1096_s28  ;;  %p1100_p10 = scmp.lt.u32.totalorder %s1096_s28, %s1419_s6 }
 0x490   :  { %p1102_p11 = pnand %p1100_p10, %p1097_p9 }
 0x492   :  { %1105 = shalt.err (!%p1102_p11)
}
 0x493   :  { %706 = dma.vmem_to_hbm [thread:$0]  %s701_s23, 1024, %s1419_s6, [#allocation4], %s1119_s0, %s1119_s0, %s1120_s24  }
 0x494   :  { %1112 = dma.done.wait [#allocation4], 1024  }
 0x495   :  { %1113 = vsyncadd [#allocation4], 4294966272 }
 0x496   :  { %710 = vsyncpa [#allocation3], 1 }
 0x497   :  { %711 = vsyncpa [#allocation6], 1 }
 0x498   :  { %712 = vsyncpa [#allocation9], 1 }
 0x499   :  { %713 = vsyncpa [#allocation4], 1 }

</bundles_post_ra>
